<compile_context>
chip_gen: v5e
topology: v5e:2x2
jax: 0.10.0
libtpu: 0.0.40
codegen_flags: <defaults>
</compile_context>

<pallas_src>
from functools import partial

import jax
import jax.numpy as jnp
import numpy as np
from jax.experimental import pallas as pl
from jax.experimental.pallas import tpu as pltpu

NUM_BITS_ACTS = 8
NUM_BITS_PARAMS = 8
NUM_BITS_ACCUM = 32

# distiller.get_quantized_range(num_bits, signed=True) -> (-2^(n-1), 2^(n-1)-1)
ACTS_MIN_Q = float(-(2 ** (NUM_BITS_ACTS - 1)))
ACTS_MAX_Q = float(2 ** (NUM_BITS_ACTS - 1) - 1)
PARAMS_MIN_Q = float(-(2 ** (NUM_BITS_PARAMS - 1)))
PARAMS_MAX_Q = float(2 ** (NUM_BITS_PARAMS - 1) - 1)
ACCUM_MIN_Q = float(-(2 ** (NUM_BITS_ACCUM - 1)))
ACCUM_MAX_Q = float(2 ** (NUM_BITS_ACCUM - 1) - 1)
# symmetric_linear_quantization_params: scale = (2^(n-1) - 1) / sat_val, zero-point = 0
ACTS_SAT_N = float(2 ** (NUM_BITS_ACTS - 1) - 1)
PARAMS_SAT_N = float(2 ** (NUM_BITS_PARAMS - 1) - 1)


def _symmetric_scale(sat_val, n):
    return jnp.where(sat_val == 0.0, 1.0, n / sat_val)


def _round_up(x, m):
    return ((x + m - 1) // m) * m


def _default_mxu_dtypes():
    """int8 inputs + exact int32 accumulation on v5e/v6e (native integer MXU);
    bf16 inputs + f32 accumulation otherwise (v7x MXU has no integer path — all int8
    codes are exactly representable in bf16)."""
    kind = jax.devices()[0].device_kind.lower()
    if ("v5" in kind) or ("v6" in kind):
        return jnp.int8, jnp.int32
    return jnp.bfloat16, jnp.float32


def _default_tiles(compute_dtype):
    """Per-generation tile / VMEM-limit defaults (tm, tk, tn, vmem_limit_bytes)."""
    if compute_dtype == jnp.int8:
        # v5e / v6e: 128 MiB physical VMEM, int8 weight tiles are cheap -> go big.
        return 256, 1024, 1024, 64 * 1024 * 1024
    # bf16 path (v7x & others): 64 MiB physical VMEM, bf16 tiles are 2x the bytes.
    return 256, 512, 512, 32 * 1024 * 1024


# ---------------------------------------------------------------------------
# Pass A: tiled matmul (pre-quantized x, pre-quantized/transposed w) + bias +
#         accumulator clamp + per-(i,j)-tile max|accum| side channel
# ---------------------------------------------------------------------------
def _make_matmul_kernel(acc_dtype):
    def kernel(scales_ref, nvalid_ref, xq_ref, w_ref, b_ref,
               acc_out_ref, tmax_ref, acc_ref):
        # All grid queries are evaluated at the TOP LEVEL of the body (never inside a
        # pl.when closure) so they are always substituted by the grid machinery.
        k = pl.program_id(2)
        last_k = pl.num_programs(2) - 1
        row_base = pl.program_id(0) * acc_ref.shape[0]

        @pl.when(k == 0)
        def _():
            acc_ref[...] = jnp.zeros_like(acc_ref)

        # x arrives pre-quantized (int8 codes) in the MXU input dtype; weights arrive
        # pre-quantized, pre-transposed to (IN, OUT) and pre-cast at construction time.
        acc_ref[...] += jnp.dot(xq_ref[...], w_ref[...],
                                preferred_element_type=acc_dtype)

        @pl.when(k == last_k)
        def _():
            accum_scale = scales_ref[0]
            # Bias quantized on-the-fly at accum_scale (depends on the dynamic in_scale).
            b_q = jnp.clip(jnp.round(b_ref[...] * accum_scale), ACCUM_MIN_Q, ACCUM_MAX_Q)
            acc = acc_ref[...].astype(jnp.float32) + b_q
            acc = jnp.clip(acc, ACCUM_MIN_Q, ACCUM_MAX_Q)
            acc_out_ref[...] = acc

            # Per-tile max|accum| over *valid* batch rows only (padded rows carry bias
            # and must not influence the global dynamic output range).
            row = jax.lax.broadcasted_iota(jnp.int32, acc.shape, 0) + row_base
            masked = jnp.where(row < nvalid_ref[0], jnp.abs(acc), 0.0)
            tmax_ref[...] = jnp.full(tmax_ref.shape, jnp.max(masked), jnp.float32)

    return kernel


# ---------------------------------------------------------------------------
# Pass B: requantize to 8-bit output range + dequantize back to FP32 (in place)
# ---------------------------------------------------------------------------
def _requant_dequant_kernel(scales_ref, acc_ref, out_ref):
    requant_scale = scales_ref[0]   # out_scale / accum_scale
    inv_out_scale = scales_ref[1]   # 1 / out_scale (precomputed: no per-element divide)
    out_q = jnp.clip(jnp.round(acc_ref[...] * requant_scale), ACTS_MIN_Q, ACTS_MAX_Q)
    out_ref[...] = out_q * inv_out_scale


# ---------------------------------------------------------------------------
# Forward
# ---------------------------------------------------------------------------
@partial(jax.jit,
         static_argnames=("out_features", "tm", "tk", "tn",
                          "compute_dtype", "acc_dtype", "vmem_limit"))
def _rlq_forward(x, w_qT, bias_pad, w_scale, *,
                 out_features, tm, tk, tn, compute_dtype, acc_dtype, vmem_limit):
    B, IN = x.shape
    in_pad, out_pad = w_qT.shape
    x = x.astype(jnp.float32)

    # ---- _prepare_input: dynamic per-tensor symmetric quant params (global max) ----
    in_scale = _symmetric_scale(jnp.max(jnp.abs(x)), ACTS_SAT_N)
    accum_scale = in_scale * w_scale

    # Quantize + cast + pad x ONCE (fused XLA elementwise pass).  Pass A then streams
    # the activations at 1 byte/elem (int8) or 2 bytes/elem (bf16) instead of reading
    # f32 and redoing round/clip per (j, k) tile inside the MXU loop.
    x_q = jnp.clip(jnp.round(x * in_scale), ACTS_MIN_Q, ACTS_MAX_Q).astype(compute_dtype)

    tm_eff = min(tm, _round_up(B, 8))
    b_pad = _round_up(B, tm_eff)
    x_qp = jnp.zeros((b_pad, in_pad), compute_dtype).at[:B, :IN].set(x_q)

    grid_m, grid_n, grid_k = b_pad // tm_eff, out_pad // tn, in_pad // tk

    scales_a = jnp.reshape(accum_scale.astype(jnp.float32), (1,))
    nvalid = jnp.array([B], jnp.int32)

    itemsize = jnp.dtype(compute_dtype).itemsize
    cost = pl.CostEstimate(
        flops=2 * b_pad * in_pad * out_pad,
        transcendentals=0,
        bytes_accessed=(b_pad * in_pad * itemsize * grid_n   # x re-read per n tile
                        + in_pad * out_pad * itemsize        # weights
                        + b_pad * out_pad * 4))              # f32 accumulator out

    accum, tile_max = pl.pallas_call(
        _make_matmul_kernel(acc_dtype),
        out_shape=(jax.ShapeDtypeStruct((b_pad, out_pad), jnp.float32),
                   jax.ShapeDtypeStruct((grid_m * 8, grid_n * 128), jnp.float32)),
        grid_spec=pltpu.PrefetchScalarGridSpec(
            num_scalar_prefetch=0,
            grid=(grid_m, grid_n, grid_k),
            in_specs=[
                pl.BlockSpec(memory_space=pltpu.MemorySpace.SMEM),  # [accum_scale]
                pl.BlockSpec(memory_space=pltpu.MemorySpace.SMEM),  # valid batch rows
                pl.BlockSpec((tm_eff, tk), lambda i, j, k: (i, k)),  # x_q (compute dtype)
                pl.BlockSpec((tk, tn), lambda i, j, k: (k, j)),      # w_q^T (IN, OUT)
                pl.BlockSpec((1, tn), lambda i, j, k: (0, j)),       # bias (f32)
            ],
            out_specs=(
                pl.BlockSpec((tm_eff, tn), lambda i, j, k: (i, j)),  # accumulator (f32)
                pl.BlockSpec((8, 128), lambda i, j, k: (i, j)),      # per-tile max|accum|
            ),
            scratch_shapes=[pltpu.VMEM((tm_eff, tn), acc_dtype)],
        ),
        compiler_params=pltpu.CompilerParams(
            dimension_semantics=("parallel", "parallel", "arbitrary"),
            vmem_limit_bytes=vmem_limit,
        ),
        cost_estimate=cost,
    )(scales_a, nvalid, x_qp, w_qT, bias_pad)

    # ---- get_output_quantization_params (dynamic, global over all tiles) ----
    # max|accum / accum_scale| == max|accum| / accum_scale  (accum_scale > 0)
    out_sat = jnp.max(tile_max) / accum_scale
    out_scale = _symmetric_scale(out_sat, ACTS_SAT_N)        # out_zp = 0
    requant_scale = out_scale / accum_scale
    inv_out_scale = 1.0 / out_scale
    scales_b = jnp.stack([requant_scale, inv_out_scale]).astype(jnp.float32)

    # ---- Pass B: lane-dense streaming requant+dequant, written in place over accum ----
    if tm_eff * out_pad * 4 <= 4 * 1024 * 1024:
        col_blk = out_pad                     # whole padded output row per block
    else:
        col_blk = tn
    grid_bn = out_pad // col_blk

    out_padded = pl.pallas_call(
        _requant_dequant_kernel,
        out_shape=jax.ShapeDtypeStruct((b_pad, out_pad), jnp.float32),
        grid_spec=pltpu.PrefetchScalarGridSpec(
            num_scalar_prefetch=0,
            grid=(grid_m, grid_bn),
            in_specs=[
                pl.BlockSpec(memory_space=pltpu.MemorySpace.SMEM),
                pl.BlockSpec((tm_eff, col_blk), lambda i, j: (i, j)),
            ],
            out_specs=pl.BlockSpec((tm_eff, col_blk), lambda i, j: (i, j)),
        ),
        compiler_params=pltpu.CompilerParams(
            dimension_semantics=("parallel", "parallel"),
            vmem_limit_bytes=vmem_limit),
        input_output_aliases={1: 0},          # reuse the accumulator buffer
    )(scales_b, accum)

    return out_padded[:B, :out_features]


class RangeLinearQuantLinear:
    """Pallas analogue of RangeLinearQuantWrapper(nn.Linear(IN, OUT)), eval mode."""

    def __init__(self, weight, bias, *, compute_dtype=None,
                 tm=None, tk=None, tn=None, vmem_limit_bytes=None):
        if compute_dtype is None:
            compute_dtype, acc_dtype = _default_mxu_dtypes()
        else:
            acc_dtype = jnp.int32 if compute_dtype == jnp.int8 else jnp.float32
        self.compute_dtype, self.acc_dtype = compute_dtype, acc_dtype

        d_tm, d_tk, d_tn, d_vmem = _default_tiles(compute_dtype)
        self.tm = tm or d_tm
        tk = tk or d_tk
        tn = tn or d_tn
        self.vmem_limit = vmem_limit_bytes or d_vmem

        weight = jnp.asarray(weight, jnp.float32)   # (OUT, IN), like torch.nn.Linear
        bias = jnp.asarray(bias, jnp.float32)       # (OUT,)
        OUT, IN = weight.shape
        self.in_features, self.out_features = IN, OUT

        # Clamp tiles to the 256-aligned problem so tiny layers don't over-pad, while
        # keeping >=256-wide operands for the v6e/v7x 2x256^2 MXU (128-mult ok on v5e).
        self.tk = min(tk, _round_up(IN, 256))
        self.tn = min(tn, _round_up(OUT, 256))
        in_pad, out_pad = _round_up(IN, self.tk), _round_up(OUT, self.tn)

        # __init__-time weight quantization (done once, NOT per forward call).
        w_sat = jnp.max(jnp.abs(weight))
        self.w_scale = _symmetric_scale(w_sat, PARAMS_SAT_N)
        w_q = jnp.clip(jnp.round(weight * self.w_scale), PARAMS_MIN_Q, PARAMS_MAX_Q)
        # Pre-transpose to (IN, OUT) so the MXU consumes the natural layout, zero-pad to
        # tile multiples, and cast to the MXU input dtype (int8 codes exact in int8/bf16).
        w_qT = jnp.zeros((in_pad, out_pad), jnp.float32).at[:IN, :OUT].set(w_q.T)
        self.w_qT = w_qT.astype(compute_dtype)
        self.bias_pad = jnp.zeros((1, out_pad), jnp.float32).at[0, :OUT].set(bias)

    def __call__(self, x):
        # NOTE: the int8 path accumulates exactly in int32; the bf16 path accumulates in
        # f32, which matches distiller's float-tensor accumulation (exact below 2^24).
        return _rlq_forward(
            x, self.w_qT, self.bias_pad, self.w_scale,
            out_features=self.out_features,
            tm=self.tm, tk=self.tk, tn=self.tn,
            compute_dtype=self.compute_dtype, acc_dtype=self.acc_dtype,
            vmem_limit=self.vmem_limit)


def _reference(x, weight, bias):
    """Pure-JAX reference of the same quantization pipeline (for sanity checking)."""
    w_scale = _symmetric_scale(jnp.max(jnp.abs(weight)), PARAMS_SAT_N)
    w_q = jnp.clip(jnp.round(weight * w_scale), PARAMS_MIN_Q, PARAMS_MAX_Q)
    in_scale = _symmetric_scale(jnp.max(jnp.abs(x)), ACTS_SAT_N)
    x_q = jnp.clip(jnp.round(x * in_scale), ACTS_MIN_Q, ACTS_MAX_Q)
    accum_scale = in_scale * w_scale
    b_q = jnp.clip(jnp.round(bias * accum_scale), ACCUM_MIN_Q, ACCUM_MAX_Q)
    accum = jnp.dot(x_q, w_q.T, precision=jax.lax.Precision.HIGHEST) + b_q
    accum = jnp.clip(accum, ACCUM_MIN_Q, ACCUM_MAX_Q)
    out_scale = _symmetric_scale(jnp.max(jnp.abs(accum)) / accum_scale, ACTS_SAT_N)
    out_q = jnp.clip(jnp.round(accum * (out_scale / accum_scale)), ACTS_MIN_Q, ACTS_MAX_Q)
    return out_q * (1.0 / out_scale)


if __name__ == "__main__":
    key = jax.random.PRNGKey(0)
    kx, kw, kb = jax.random.split(key, 3)

    # Small shapes, deliberately NOT multiples of the tile sizes (exercises padding,
    # batch-row masking and the k-accumulation / epilogue paths).
    B, IN, OUT = 12, 200, 150
    x = jax.random.normal(kx, (B, IN), dtype=jnp.float32)
    weight = 0.1 * jax.random.normal(kw, (OUT, IN), dtype=jnp.float32)  # nn.Linear layout
    bias = 0.1 * jax.random.normal(kb, (OUT,), dtype=jnp.float32)

    try:
        layer = RangeLinearQuantLinear(weight, bias)   # per-generation tile defaults
        out = layer(x)
        jax.block_until_ready(out)
    except Exception:
        # Conservative fallback if the auto-selected int8 MXU path is not supported by
        # the local TPU generation / toolchain: bf16 inputs + f32 accumulation.
        layer = RangeLinearQuantLinear(weight, bias, compute_dtype=jnp.bfloat16)
        out = layer(x)
        jax.block_until_ready(out)

    ref = _reference(x, weight, bias)
    np.testing.assert_allclose(np.asarray(out), np.asarray(ref), rtol=1e-5, atol=1e-5)

    # TODO(synk): the path_conf validity-dump / ref-dump file branch, the preset
    # activation-stats (static quant params) path, input_overrides handling, non-NONE
    # clip modes / asymmetric modes, scale_approx_mult_bits and the num_forwards buffer
    # bookkeeping of the original module have no Pallas equivalent and are omitted.
    print("KERNEL_OK")
</pallas_src>

<mosaic_0001>
module attributes {stable_mosaic.version = 11 : i64} {
  func.func @kernel(%arg0: i32, %arg1: i32, %arg2: i32, %arg3: memref<1xf32, #tpu.memory_space<smem>>, %arg4: memref<1xi32, #tpu.memory_space<smem>>, %arg5: memref<16x256xbf16, #tpu.memory_space<vmem>>, %arg6: memref<256x256xbf16, #tpu.memory_space<vmem>>, %arg7: memref<1x256xf32, #tpu.memory_space<vmem>>, %arg8: memref<16x256xf32, #tpu.memory_space<vmem>>, %arg9: memref<8x128xf32, #tpu.memory_space<vmem>>, %arg10: memref<16x256xf32, #tpu.memory_space<vmem>>) attributes {dimension_semantics = [#tpu.dimension_semantics<parallel>, #tpu.dimension_semantics<parallel>, #tpu.dimension_semantics<arbitrary>], iteration_bounds = array<i64: 1, 1, 1>, scalar_prefetch = 0 : i64, scratch_operands = 1 : i64, tpu.core_type = #tpu.core_type<tc>, window_params = [{transform_indices = @transform_0, window_bounds = array<i64: 1>}, {transform_indices = @transform_1, window_bounds = array<i64: 1>}, {transform_indices = @transform_2, window_bounds = array<i64: 16, 256>}, {transform_indices = @transform_3, window_bounds = array<i64: 256, 256>}, {transform_indices = @transform_4, window_bounds = array<i64: 1, 256>}, {transform_indices = @transform_5, window_bounds = array<i64: 16, 256>}, {transform_indices = @transform_6, window_bounds = array<i64: 8, 128>}]} {
    %c16_i32 = arith.constant 16 : i32
    %0 = arith.muli %arg0, %c16_i32 : i32
    %c0_i32 = arith.constant 0 : i32
    %1 = arith.cmpi eq, %arg2, %c0_i32 : i32
    %2 = arith.extui %1 : i1 to i32
    %c0_i32_0 = arith.constant 0 : i32
    %3 = arith.cmpi ne, %2, %c0_i32_0 : i32
    scf.if %3 {
      %cst_10 = arith.constant 0.000000e+00 : f32
      %13 = vector.broadcast %cst_10 : f32 to vector<16x256xf32>
      %c0_11 = arith.constant 0 : index
      %c0_12 = arith.constant 0 : index
      %14 = vector.load %arg10[%c0_11, %c0_12] : memref<16x256xf32, #tpu.memory_space<vmem>>, vector<16x256xf32>
      tpu.vector_store %arg10[%c0_11, %c0_12], %13 {strides = array<i32>} : memref<16x256xf32, #tpu.memory_space<vmem>>, vector<16x256xf32>,
    } else {
    }
    %c0 = arith.constant 0 : index
    %c0_1 = arith.constant 0 : index
    %4 = vector.load %arg10[%c0, %c0_1] : memref<16x256xf32, #tpu.memory_space<vmem>>, vector<16x256xf32>
    %c0_2 = arith.constant 0 : index
    %c0_3 = arith.constant 0 : index
    %5 = vector.load %arg5[%c0_2, %c0_3] : memref<16x256xbf16, #tpu.memory_space<vmem>>, vector<16x256xbf16>
    %c0_4 = arith.constant 0 : index
    %c0_5 = arith.constant 0 : index
    %6 = vector.load %arg6[%c0_4, %c0_5] : memref<256x256xbf16, #tpu.memory_space<vmem>>, vector<256x256xbf16>
    %cst = arith.constant dense<0.000000e+00> : vector<16x256xf32>
    %7 = tpu.matmul %5, %6, %cst {dimension_numbers = #tpu.dot_dimension_numbers<[1], [0], [0], [1], [0, 0, 1, 1], [], []>} : vector<16x256xbf16>, vector<256x256xbf16>, vector<16x256xf32> -> vector<16x256xf32>
    %8 = arith.addf %4, %7 : vector<16x256xf32>
    %c0_6 = arith.constant 0 : index
    %c0_7 = arith.constant 0 : index
    %9 = vector.load %arg10[%c0_6, %c0_7] : memref<16x256xf32, #tpu.memory_space<vmem>>, vector<16x256xf32>
    tpu.vector_store %arg10[%c0_6, %c0_7], %8 {strides = array<i32>} : memref<16x256xf32, #tpu.memory_space<vmem>>, vector<16x256xf32>,
    %c0_i32_8 = arith.constant 0 : i32
    %10 = arith.cmpi eq, %arg2, %c0_i32_8 : i32
    %11 = arith.extui %10 : i1 to i32
    %c0_i32_9 = arith.constant 0 : i32
    %12 = arith.cmpi ne, %11, %c0_i32_9 : i32
    scf.if %12 {
      %c0_10 = arith.constant 0 : index
      %13 = memref.load %arg3[%c0_10] : memref<1xf32, #tpu.memory_space<smem>>
      %c0_11 = arith.constant 0 : index
      %c0_12 = arith.constant 0 : index
      %14 = vector.load %arg7[%c0_11, %c0_12] : memref<1x256xf32, #tpu.memory_space<vmem>>, vector<1x256xf32>
      %15 = vector.broadcast %13 : f32 to vector<1x256xf32>
      %16 = arith.mulf %14, %15 : vector<1x256xf32>
      %17 = math.roundeven %16 : vector<1x256xf32>
      %cst_13 = arith.constant -2.14748365E+9 : f32
      %cst_14 = arith.constant 2.14748365E+9 : f32
      %18 = vector.broadcast %cst_13 : f32 to vector<1x256xf32>
      %19 = arith.maximumf %18, %17 : vector<1x256xf32>
      %20 = vector.broadcast %cst_14 : f32 to vector<1x256xf32>
      %21 = arith.minimumf %20, %19 : vector<1x256xf32>
      %c0_15 = arith.constant 0 : index
      %c0_16 = arith.constant 0 : index
      %22 = vector.load %arg10[%c0_15, %c0_16] : memref<16x256xf32, #tpu.memory_space<vmem>>, vector<16x256xf32>
      %23 = vector.broadcast %21 : vector<1x256xf32> to vector<16x256xf32>
      %24 = arith.addf %22, %23 : vector<16x256xf32>
      %cst_17 = arith.constant -2.14748365E+9 : f32
      %cst_18 = arith.constant 2.14748365E+9 : f32
      %25 = vector.broadcast %cst_17 : f32 to vector<16x256xf32>
      %26 = arith.maximumf %25, %24 : vector<16x256xf32>
      %27 = vector.broadcast %cst_18 : f32 to vector<16x256xf32>
      %28 = arith.minimumf %27, %26 : vector<16x256xf32>
      %c0_19 = arith.constant 0 : index
      %c0_20 = arith.constant 0 : index
      %29 = vector.load %arg8[%c0_19, %c0_20] : memref<16x256xf32, #tpu.memory_space<vmem>>, vector<16x256xf32>
      tpu.vector_store %arg8[%c0_19, %c0_20], %28 {strides = array<i32>} : memref<16x256xf32, #tpu.memory_space<vmem>>, vector<16x256xf32>,
      %30 = tpu.iota {dimensions = array<i32: 0>} : vector<16x256xi32>
      %31 = vector.broadcast %0 : i32 to vector<16x256xi32>
      %32 = arith.addi %30, %31 : vector<16x256xi32>
      %c0_21 = arith.constant 0 : index
      %33 = memref.load %arg4[%c0_21] : memref<1xi32, #tpu.memory_space<smem>>
      %34 = vector.broadcast %33 : i32 to vector<16x256xi32>
      %35 = arith.cmpi slt, %32, %34 : vector<16x256xi32>
      %36 = math.absf %28 : vector<16x256xf32>
      %cst_22 = arith.constant 0.000000e+00 : f32
      %37 = vector.broadcast %cst_22 : f32 to vector<16x256xf32>
      %38 = arith.select %35, %36, %37 : vector<16x256xi1>, vector<16x256xf32>
      %39 = vector.shape_cast %38 : vector<16x256xf32> to vector<1x16x256xf32>
      %cst_23 = arith.constant dense<0xFF800000> : vector<1xf32>
      %40 = vector.multi_reduction <maximumf>, %39, %cst_23 [1, 2] : vector<1x16x256xf32> to vector<1xf32>
      %41 = vector.shape_cast %40 : vector<1xf32> to vector<1x1x1xf32>
      %42 = vector.extract %41[0, 0, 0] : f32 from vector<1x1x1xf32>
      %43 = vector.broadcast %42 : f32 to vector<8x128xf32>
      %c0_24 = arith.constant 0 : index
      %c0_25 = arith.constant 0 : index
      %44 = vector.load %arg9[%c0_24, %c0_25] : memref<8x128xf32, #tpu.memory_space<vmem>>, vector<8x128xf32>
      tpu.vector_store %arg9[%c0_24, %c0_25], %43 {strides = array<i32>} : memref<8x128xf32, #tpu.memory_space<vmem>>, vector<8x128xf32>,
    } else {
    }
    return
  }
  func.func @transform_0(%arg0: i32, %arg1: i32, %arg2: i32) -> i32 {
    %c0_i32 = arith.constant 0 : i32
    %c0_i32_0 = arith.constant 0 : i32
    return %c0_i32 : i32
  }
  func.func @transform_1(%arg0: i32, %arg1: i32, %arg2: i32) -> i32 {
    %c0_i32 = arith.constant 0 : i32
    %c0_i32_0 = arith.constant 0 : i32
    return %c0_i32 : i32
  }
  func.func @transform_2(%arg0: i32, %arg1: i32, %arg2: i32) -> (i32, i32) {
    %c0_i32 = arith.constant 0 : i32
    return %arg0, %arg2 : i32, i32
  }
  func.func @transform_3(%arg0: i32, %arg1: i32, %arg2: i32) -> (i32, i32) {
    %c0_i32 = arith.constant 0 : i32
    return %arg2, %arg1 : i32, i32
  }
  func.func @transform_4(%arg0: i32, %arg1: i32, %arg2: i32) -> (i32, i32) {
    %c0_i32 = arith.constant 0 : i32
    %c0_i32_0 = arith.constant 0 : i32
    return %c0_i32, %arg1 : i32, i32
  }
  func.func @transform_5(%arg0: i32, %arg1: i32, %arg2: i32) -> (i32, i32) {
    %c0_i32 = arith.constant 0 : i32
    return %arg0, %arg1 : i32, i32
  }
  func.func @transform_6(%arg0: i32, %arg1: i32, %arg2: i32) -> (i32, i32) {
    %c0_i32 = arith.constant 0 : i32
    return %arg0, %arg1 : i32, i32
  }
}

module attributes {stable_mosaic.version = 11 : i64} {
  func.func @_requant_dequant_kernel(%arg0: i32, %arg1: i32, %arg2: memref<2xf32, #tpu.memory_space<smem>>, %arg3: memref<16x256xf32, #tpu.memory_space<vmem>>, %arg4: memref<16x256xf32, #tpu.memory_space<vmem>>) attributes {dimension_semantics = [#tpu.dimension_semantics<parallel>, #tpu.dimension_semantics<parallel>], iteration_bounds = array<i64: 1, 1>, scalar_prefetch = 0 : i64, scratch_operands = 0 : i64, tpu.core_type = #tpu.core_type<tc>, window_params = [{transform_indices = @transform_0, window_bounds = array<i64: 2>}, {transform_indices = @transform_1, window_bounds = array<i64: 16, 256>}, {transform_indices = @transform_2, window_bounds = array<i64: 16, 256>}]} {
    %c0 = arith.constant 0 : index
    %0 = memref.load %arg2[%c0] : memref<2xf32, #tpu.memory_space<smem>>
    %c1 = arith.constant 1 : index
    %1 = memref.load %arg2[%c1] : memref<2xf32, #tpu.memory_space<smem>>
    %c0_0 = arith.constant 0 : index
    %c0_1 = arith.constant 0 : index
    %2 = vector.load %arg3[%c0_0, %c0_1] : memref<16x256xf32, #tpu.memory_space<vmem>>, vector<16x256xf32>
    %3 = vector.broadcast %0 : f32 to vector<16x256xf32>
    %4 = arith.mulf %2, %3 : vector<16x256xf32>
    %5 = math.roundeven %4 : vector<16x256xf32>
    %cst = arith.constant -1.280000e+02 : f32
    %cst_2 = arith.constant 1.270000e+02 : f32
    %6 = vector.broadcast %cst : f32 to vector<16x256xf32>
    %7 = arith.maximumf %6, %5 : vector<16x256xf32>
    %8 = vector.broadcast %cst_2 : f32 to vector<16x256xf32>
    %9 = arith.minimumf %8, %7 : vector<16x256xf32>
    %10 = vector.broadcast %1 : f32 to vector<16x256xf32>
    %11 = arith.mulf %9, %10 : vector<16x256xf32>
    %c0_3 = arith.constant 0 : index
    %c0_4 = arith.constant 0 : index
    %12 = vector.load %arg4[%c0_3, %c0_4] : memref<16x256xf32, #tpu.memory_space<vmem>>, vector<16x256xf32>
    tpu.vector_store %arg4[%c0_3, %c0_4], %11 {strides = array<i32>} : memref<16x256xf32, #tpu.memory_space<vmem>>, vector<16x256xf32>,
    return
  }
  func.func @transform_0(%arg0: i32, %arg1: i32) -> i32 {
    %c0_i32 = arith.constant 0 : i32
    %c0_i32_0 = arith.constant 0 : i32
    return %c0_i32 : i32
  }
  func.func @transform_1(%arg0: i32, %arg1: i32) -> (i32, i32) {
    %c0_i32 = arith.constant 0 : i32
    return %arg0, %arg1 : i32, i32
  }
  func.func @transform_2(%arg0: i32, %arg1: i32) -> (i32, i32) {
    %c0_i32 = arith.constant 0 : i32
    return %arg0, %arg1 : i32, i32
  }
}

</mosaic_0001>

<bundles_post_ra>
// kernel: _rlq_forward.3
= control target key start
LH: loop header
LB: loop body
LE: loop exit
PB: predicated region body
PF: predicated region fallthrough
CT: control target
= control target key end

     0   :  { %7 = vsyncpa [#allocation3], 0  ;;  %s109_s12 = smov [#allocation2]   ;;  %s158_s0 = inlined_call_operand.vmem [shape: f32[2], index: 0, kind: input, shape index: {}]   ;;  %s159_s1 = inlined_call_operand.vmem [shape: f32[16,256], index: 1, kind: input, shape index: {}, may-alias: {1,2}]   ;;  %s160_s2 = inlined_call_operand.vmem [shape: f32[16,256], index: 2, kind: output, shape index: {}, may-alias: {1,2}]  }
   0x1   :  { %s13_s11 = sshll.u32 %s158_s0, 4  ;;  %s14_s11 = int_to_ptr.vmem [resolvable:$true] %s13_s11 }
   0x2   :  { %16 = dma.vmem_to_smem %s14_s11, 16, %s109_s12, [#allocation3]  }
   0x3   :  { %107 = dma.done.wait [#allocation3], 16  }
   0x4   :  { %108 = vsyncadd [#allocation3], 4294967280 }
   0x5   :  { %23 = sfence }
   0x6   :  { %s24_s13 = sld [smem:[#allocation2]]  ;;  %v26_v0 = vld [vmem:[%s159_s1] sm:$0xff]  ;;  %v27_v1 = vld [vmem:[%s159_s1 + $0x8] sm:$0xff]  ;;  %v28_v2 = vld [vmem:[%s159_s1 + $0x10] sm:$0xff] }
   0x7   :  { %v29_v4 = vld [vmem:[%s159_s1 + $0x18] sm:$0xff]  ;;  %s61_s21 = sld [smem:[#allocation2 + $0x1]] }
   0xc   :  { %v30_v3 = vstv %s24_s13 }
   0xd   :  { %v31_v5 = vmul.f32 %v30_v3, %v26_v0  ;;  %v32_v6 = vmul.f32 %v30_v3, %v27_v1  ;;  %v33_v7 = vmul.f32 %v30_v3, %v28_v2  ;;  %v34_v11 = vmul.f32 %v30_v3, %v29_v4 }
   0xe   :  { %v47_v37 = vstv %s61_s21 }
   0xf   :  { %v62_v8 = vand.u32 2147483647, %v31_v5  ;;  %v64_v9 = vcvt.f32.s32 %v31_v5  ;;  %v70_v10 = vand.u32 2147483647, %v32_v6  ;;  %v72_v12 = vcvt.f32.s32 %v32_v6 }
  0x10   :  { %v80_v13 = vcvt.f32.s32 %v33_v7  ;;  %v67_v15 = vand.u32 2147483648, %v31_v5  ;;  %v78_v16 = vand.u32 2147483647, %v33_v7  ;;  %v75_v18 = vand.u32 2147483648, %v32_v6 }
  0x11   :  { %v65_v14 = vcvt.s32.f32 %v64_v9  ;;  %v73_v17 = vcvt.s32.f32 %v72_v12  ;;  %v83_v20 = vand.u32 2147483648, %v33_v7  ;;  %vm63_vm0 = vcmp.lt.f32.partialorder %v62_v8, 8388608.0 }
  0x12   :  { %v81_v19 = vcvt.s32.f32 %v80_v13  ;;  %vm140_vm1 = vcmp.lt.f32.partialorder %v70_v10, 8388608.0  ;;  %v88_v23 = vcvt.f32.s32 %v34_v11  ;;  %v86_v26 = vand.u32 2147483647, %v34_v11 }
  0x13   :  { %v66_v21 = vand.u32 2147483647, %v65_v14  ;;  %v74_v24 = vand.u32 2147483647, %v73_v17  ;;  %vm79_vm2 = vcmp.lt.f32.partialorder %v78_v16, 8388608.0  ;;  %v91_v29 = vand.u32 2147483648, %v34_v11 }
  0x14   :  { %v82_v25 = vand.u32 2147483647, %v81_v19  ;;  %v89_v28 = vcvt.s32.f32 %v88_v23  ;;  %vm87_vm3 = vcmp.lt.f32.partialorder %v86_v26, 8388608.0 }
  0x15   :  { %v68_v27 = vor.u32 %v67_v15, %v66_v21  ;;  %v76_v30 = vor.u32 %v75_v18, %v74_v24 }
  0x16   :  { %v84_v31 = vor.u32 %v83_v20, %v82_v25  ;;  %v90_v33 = vand.u32 2147483647, %v89_v28 }
  0x17   :  { %v69_v32 = vsel %vm63_vm0, %v68_v27, %v31_v5  ;;  %v77_v35 = vsel %vm140_vm1, %v76_v30, %v32_v6 }
  0x18   :  { %v39_v34 = vmax.f32 %v69_v32, -128.0  ;;  %v85_v36 = vsel %vm79_vm2, %v84_v31, %v33_v7  ;;  %v40_v38 = vmax.f32 %v77_v35, -128.0  ;;  %v92_v40 = vor.u32 %v91_v29, %v90_v33 }
  0x19   :  { %v41_v39 = vmax.f32 %v85_v36, -128.0 }
  0x1a   :  { %v43_v41 = vmin.f32 %v39_v34, 127.0  ;;  %v44_v42 = vmin.f32 %v40_v38, 127.0  ;;  %v93_v44 = vsel %vm87_vm3, %v92_v40, %v34_v11 }
  0x1b   :  { %v45_v43 = vmin.f32 %v41_v39, 127.0  ;;  %v42_v46 = vmax.f32 %v93_v44, -128.0 }
  0x1c   :  { %v48_v45 = vmul.f32 %v47_v37, %v43_v41  ;;  %v49_v47 = vmul.f32 %v47_v37, %v44_v42 }
  0x1d   :  { %v50_v48 = vmul.f32 %v47_v37, %v45_v43  ;;  %v46_v49 = vmin.f32 %v42_v46, 127.0 }
  0x1e   :  { %52 = vst [vmem:[%s160_s2] sm:$0xff] %v48_v45 }
  0x1f   :  { %53 = vst [vmem:[%s160_s2 + $0x8] sm:$0xff] %v49_v47  ;;  %v51_v50 = vmul.f32 %v47_v37, %v46_v49 }
  0x20   :  { %54 = vst [vmem:[%s160_s2 + $0x10] sm:$0xff] %v50_v48 }
  0x21   :  { %55 = vst [vmem:[%s160_s2 + $0x18] sm:$0xff] %v51_v50 }
  0x22   :  { %60 = vsyncpa [#allocation3], 1 }

// kernel: _rlq_forward.2
= control target key start
LH: loop header
LB: loop body
LE: loop exit
PB: predicated region body
PF: predicated region fallthrough
CT: control target
= control target key end

     0   :  { %14 = vsyncpa [#allocation6], 0  ;;  %s611_s24 = smov [#allocation5]   ;;  %s612_s26 = smov 128   ;;  %s688_s0 = inlined_call_operand.<no memory space> [shape: f32[1], index: 0, kind: input, shape index: {}]   ;;  %s689_s1 = inlined_call_operand.<no memory space> [shape: s32[1], index: 1, kind: input, shape index: {}]   ;;  %s690_s2 = inlined_call_operand.vmem [shape: bf16[16,256], index: 2, kind: input, shape index: {}]   ;;  %s691_s3 = inlined_call_operand.hbm [shape: bf16[256,256], index: 3, kind: input, shape index: {}]   ;;  %s692_s4 = inlined_call_operand.vmem [shape: f32[1,256], index: 4, kind: input, shape index: {}]   ;;  %s693_s5 = inlined_call_operand.vmem [shape: f32[16,256], index: 5, kind: output, shape index: {0}]   ;;  %s694_s6 = inlined_call_operand.vmem [shape: f32[8,128], index: 6, kind: output, shape index: {1}]  }
   0x1   :  { %s25_s23 = sshll.u32 %s691_s3, 4  ;;  %s27_s25 = sshll.u32 %s611_s24, 4  ;;  %s26_s23 = int_to_ptr.hbm [resolvable:$true] %s25_s23  ;;  %s28_s25 = int_to_ptr.vmem [resolvable:$true] %s27_s25 }
   0x2   :  { %s613_s27 = smov 8  }
   0x3   :  { %33 = dma.hbm_to_vmem [thread:$0]  %s26_s23, 4096, %s28_s25, [#allocation6], %s612_s26, %s612_s26, %s613_s27  }
   0x4   :  { %609 = dma.done.wait [#allocation6], 4096  }
   0x5   :  { %610 = vsyncadd [#allocation6], 4294963200  ;;  %v463_v0 = vld [vmem:[#allocation5 + $0x70] sm:$0xf]  ;;  %v555_v1 = vld [vmem:[#allocation5 + $0x74] sm:$0xf0] }
   0x6   :  { %v527_v2 = vld [vmem:[#allocation5 + $0xf0] sm:$0xf]  ;;  %v464_v3 = vor.u32 %v555_v1, %v463_v0  ;;  %v571_v4 = vld [vmem:[#allocation5 + $0xf4] sm:$0xf0]  ;;  %v554_v5 = vld [vmem:[#allocation5 + $0x74] sm:$0xf] }
   0x7   :  { %v465_v6 = vld [vmem:[#allocation5 + $0x78] sm:$0xf0]  ;;  %v528_v7 = vor.u32 %v571_v4, %v527_v2  ;;  %v570_v9 = vld [vmem:[#allocation5 + $0xf4] sm:$0xf]  ;;  %v455_v11 = vld [vmem:[#allocation5 + $0x60] sm:$0xf] }
   0x8   :  { %v468_v8 = vor.u32 %v554_v5, %v465_v6  ;;  %v529_v10 = vld [vmem:[#allocation5 + $0xf8] sm:$0xf0]  ;;  %257 = vmatpush.bf16.msra.mxu0 %v464_v3  ;;  %v553_v13 = vld [vmem:[#allocation5 + $0x64] sm:$0xf0]  ;;  %v519_v14 = vld [vmem:[#allocation5 + $0xe0] sm:$0xf] }
   0x9   :  { %v532_v12 = vor.u32 %v570_v9, %v529_v10  ;;  %v569_v15 = vld [vmem:[#allocation5 + $0xe4] sm:$0xf0]  ;;  %271 = vmatpush.bf16.msra.mxu1 %v528_v7  ;;  %v456_v16 = vor.u32 %v553_v13, %v455_v11  ;;  %v552_v18 = vld [vmem:[#allocation5 + $0x64] sm:$0xf]  ;;  %v457_v19 = vld [vmem:[#allocation5 + $0x68] sm:$0xf0] }
   0xa   :  { %285 = vmatpush.bf16.msra.mxu2 %v468_v8  ;;  %v520_v17 = vor.u32 %v569_v15, %v519_v14  ;;  %v568_v20 = vld [vmem:[#allocation5 + $0xe4] sm:$0xf]  ;;  %v460_v21 = vor.u32 %v552_v18, %v457_v19  ;;  %v521_v22 = vld [vmem:[#allocation5 + $0xe8] sm:$0xf0]  ;;  %v447_v23 = vld [vmem:[#allocation5 + $0x50] sm:$0xf] }
   0xb   :  { %299 = vmatpush.bf16.msra.mxu3 %v532_v12  ;;  %v551_v24 = vld [vmem:[#allocation5 + $0x54] sm:$0xf0]  ;;  %v524_v25 = vor.u32 %v568_v20, %v521_v22  ;;  %v511_v26 = vld [vmem:[#allocation5 + $0xd0] sm:$0xf]  ;;  %v550_v28 = vld [vmem:[#allocation5 + $0x54] sm:$0xf] }
   0xc   :  { %v567_v27 = vld [vmem:[#allocation5 + $0xd4] sm:$0xf0]  ;;  %258 = vmatpush.bf16.msra.mxu0 %v456_v16  ;;  %v448_v29 = vor.u32 %v551_v24, %v447_v23  ;;  %v449_v30 = vld [vmem:[#allocation5 + $0x58] sm:$0xf0]  ;;  %v566_v31 = vld [vmem:[#allocation5 + $0xd4] sm:$0xf] }
   0xd   :  { %v513_v32 = vld [vmem:[#allocation5 + $0xd8] sm:$0xf0]  ;;  %272 = vmatpush.bf16.msra.mxu1 %v520_v17  ;;  %v512_v33 = vor.u32 %v567_v27, %v511_v26  ;;  %v452_v34 = vor.u32 %v550_v28, %v449_v30  ;;  %v439_v35 = vld [vmem:[#allocation5 + $0x40] sm:$0xf]  ;;  %v549_v36 = vld [vmem:[#allocation5 + $0x44] sm:$0xf0] }
   0xe   :  { %286 = vmatpush.bf16.msra.mxu2 %v460_v21  ;;  %v503_v37 = vld [vmem:[#allocation5 + $0xc0] sm:$0xf]  ;;  %v516_v38 = vor.u32 %v566_v31, %v513_v32  ;;  %v565_v39 = vld [vmem:[#allocation5 + $0xc4] sm:$0xf0]  ;;  %v548_v40 = vld [vmem:[#allocation5 + $0x44] sm:$0xf]  ;;  %v440_v44 = vor.u32 %v549_v36, %v439_v35 }
   0xf   :  { %300 = vmatpush.bf16.msra.mxu3 %v524_v25  ;;  %v441_v41 = vld [vmem:[#allocation5 + $0x48] sm:$0xf0]  ;;  %v564_v42 = vld [vmem:[#allocation5 + $0xc4] sm:$0xf]  ;;  %v504_v45 = vor.u32 %v565_v39, %v503_v37  ;;  %v431_v47 = vld [vmem:[#allocation5 + $0x30] sm:$0xf]  ;;  %v326_v39 = vstv %s688_s0 }
  0x10   :  { %v505_v43 = vld [vmem:[#allocation5 + $0xc8] sm:$0xf0]  ;;  %259 = vmatpush.bf16.msra.mxu0 %v448_v29  ;;  %v444_v46 = vor.u32 %v548_v40, %v441_v41  ;;  %v547_v48 = vld [vmem:[#allocation5 + $0x34] sm:$0xf0]  ;;  %v495_v49 = vld [vmem:[#allocation5 + $0xb0] sm:$0xf] }
  0x11   :  { %273 = vmatpush.bf16.msra.mxu1 %v512_v33  ;;  %v508_v50 = vor.u32 %v564_v42, %v505_v43  ;;  %v563_v51 = vld [vmem:[#allocation5 + $0xb4] sm:$0xf0]  ;;  %v546_v52 = vld [vmem:[#allocation5 + $0x34] sm:$0xf]  ;;  %v433_v53 = vld [vmem:[#allocation5 + $0x38] sm:$0xf0]  ;;  %v432_v56 = vor.u32 %v547_v48, %v431_v47 }
  0x12   :  { %287 = vmatpush.bf16.msra.mxu2 %v452_v34  ;;  %v562_v54 = vld [vmem:[#allocation5 + $0xb4] sm:$0xf]  ;;  %v497_v55 = vld [vmem:[#allocation5 + $0xb8] sm:$0xf0]  ;;  %v496_v57 = vor.u32 %v563_v51, %v495_v49  ;;  %v436_v58 = vor.u32 %v546_v52, %v433_v53  ;;  %v423_v59 = vld [vmem:[#allocation5 + $0x20] sm:$0xf] }
  0x13   :  { %301 = vmatpush.bf16.msra.mxu3 %v516_v38  ;;  %v545_v60 = vld [vmem:[#allocation5 + $0x24] sm:$0xf0]  ;;  %v487_v61 = vld [vmem:[#allocation5 + $0xa0] sm:$0xf]  ;;  %v500_v62 = vor.u32 %v562_v54, %v497_v55  ;;  %v544_v0 = vld [vmem:[#allocation5 + $0x24] sm:$0xf] }
  0x14   :  { %260 = vmatpush.bf16.msra.mxu0 %v440_v44  ;;  %v561_v63 = vld [vmem:[#allocation5 + $0xa4] sm:$0xf0]  ;;  %v425_v1 = vld [vmem:[#allocation5 + $0x28] sm:$0xf0]  ;;  %v560_v2 = vld [vmem:[#allocation5 + $0xa4] sm:$0xf]  ;;  %v424_v4 = vor.u32 %v545_v60, %v423_v59 }
  0x15   :  { %274 = vmatpush.bf16.msra.mxu1 %v504_v45  ;;  %v489_v3 = vld [vmem:[#allocation5 + $0xa8] sm:$0xf0]  ;;  %v488_v5 = vor.u32 %v561_v63, %v487_v61  ;;  %v428_v6 = vor.u32 %v544_v0, %v425_v1  ;;  %v415_v7 = vld [vmem:[#allocation5 + $0x10] sm:$0xf]  ;;  %v543_v8 = vld [vmem:[#allocation5 + $0x14] sm:$0xf0] }
  0x16   :  { %288 = vmatpush.bf16.msra.mxu2 %v444_v46  ;;  %v479_v9 = vld [vmem:[#allocation5 + $0x90] sm:$0xf]  ;;  %v492_v10 = vor.u32 %v560_v2, %v489_v3  ;;  %v559_v11 = vld [vmem:[#allocation5 + $0x94] sm:$0xf0]  ;;  %v542_v12 = vld [vmem:[#allocation5 + $0x14] sm:$0xf]  ;;  %v416_v16 = vor.u32 %v543_v8, %v415_v7  ;;  %v363_v7 = vstv %s689_s1 }
  0x17   :  { %302 = vmatpush.bf16.msra.mxu3 %v508_v50  ;;  %v417_v13 = vld [vmem:[#allocation5 + $0x18] sm:$0xf0]  ;;  %v558_v14 = vld [vmem:[#allocation5 + $0x94] sm:$0xf]  ;;  %v480_v17 = vor.u32 %v559_v11, %v479_v9  ;;  %v407_v19 = vld [vmem:[#allocation5] sm:$0xf] }
  0x18   :  { %261 = vmatpush.bf16.msra.mxu0 %v432_v56  ;;  %v481_v15 = vld [vmem:[#allocation5 + $0x98] sm:$0xf0]  ;;  %v420_v18 = vor.u32 %v542_v12, %v417_v13  ;;  %v541_v20 = vld [vmem:[#allocation5 + $0x4] sm:$0xf0]  ;;  %v471_v21 = vld [vmem:[#allocation5 + $0x80] sm:$0xf] }
  0x19   :  { %275 = vmatpush.bf16.msra.mxu1 %v496_v57  ;;  %v484_v22 = vor.u32 %v558_v14, %v481_v15  ;;  %v557_v23 = vld [vmem:[#allocation5 + $0x84] sm:$0xf0]  ;;  %v540_v24 = vld [vmem:[#allocation5 + $0x4] sm:$0xf]  ;;  %v409_v25 = vld [vmem:[#allocation5 + $0x8] sm:$0xf0]  ;;  %v408_v28 = vor.u32 %v541_v20, %v407_v19 }
  0x1a   :  { %289 = vmatpush.bf16.msra.mxu2 %v436_v58  ;;  %v556_v26 = vld [vmem:[#allocation5 + $0x84] sm:$0xf]  ;;  %v473_v27 = vld [vmem:[#allocation5 + $0x88] sm:$0xf0]  ;;  %v399_v29 = vld [vmem:[%s690_s2] sm:$0xf]  ;;  %v472_v31 = vor.u32 %v557_v23, %v471_v21  ;;  %v412_v32 = vor.u32 %v540_v24, %v409_v25 }
  0x1b   :  { %303 = vmatpush.bf16.msra.mxu3 %v500_v62  ;;  %v539_v30 = vld [vmem:[%s690_s2 + $0x4] sm:$0xf0]  ;;  %v538_v33 = vld [vmem:[%s690_s2 + $0x4] sm:$0xf]  ;;  %v401_v34 = vld [vmem:[%s690_s2 + $0x8] sm:$0xf0]  ;;  %v476_v35 = vor.u32 %v556_v26, %v473_v27  ;;  %v356_v62 = vlaneseq }
  0x1c   :  { %262 = vmatpush.bf16.msra.mxu0 %v424_v4  ;;  %v400_v36 = vor.u32 %v539_v30, %v399_v29  ;;  %v404_v37 = vor.u32 %v538_v33, %v401_v34  ;;  %v325_v38 = vld [vmem:[%s692_s4] sm:$0x3] }
  0x1d   :  { %276 = vmatpush.bf16.msra.mxu1 %v488_v5  ;;  %v327_v40 = vmul.f32 %v326_v39, %v325_v38  ;;  %v357_v3 = vshrl.u32 %v356_v62, 7 }
  0x1e   :  { %290 = vmatpush.bf16.msra.mxu2 %v428_v6 }
  0x1f   :  { %304 = vmatpush.bf16.msra.mxu3 %v492_v10  ;;  %v574_v41 = vcvt.f32.s32 %v327_v40  ;;  %v577_v44 = vand.u32 2147483648, %v327_v40  ;;  %v572_v45 = vand.u32 2147483647, %v327_v40  ;;  %v358_v8 = vadd.s32 8, %v357_v3 }
  0x20   :  { %263 = vmatpush.bf16.msra.mxu0 %v416_v16  ;;  %vm364_vm1 = vcmp.lt.s32.totalorder %v357_v3, %v363_v7 }
  0x21   :  { %277 = vmatpush.bf16.msra.mxu1 %v480_v17  ;;  %v575_v42 = vcvt.s32.f32 %v574_v41  ;;  %vm573_vm0 = vcmp.lt.f32.partialorder %v572_v45, 8388608.0  ;;  %vm365_vm2 = vcmp.lt.s32.totalorder %v358_v8, %v363_v7 }
  0x22   :  { %291 = vmatpush.bf16.msra.mxu2 %v420_v18 }
  0x23   :  { %305 = vmatpush.bf16.msra.mxu3 %v484_v22  ;;  %v576_v43 = vand.u32 2147483647, %v575_v42 }
  0x24   :  { %264 = vmatpush.bf16.msra.mxu0 %v408_v28 }
  0x25   :  { %278 = vmatpush.bf16.msra.mxu1 %v472_v31  ;;  %v578_v46 = vor.u32 %v577_v44, %v576_v43 }
  0x26   :  { %292 = vmatpush.bf16.msra.mxu2 %v412_v32 }
  0x27   :  { %306 = vmatpush.bf16.msra.mxu3 %v476_v35  ;;  %265 = vmatmul.bf16.vlgmr.msra.gmra.mxu0 %v400_v36  ;;  %v579_v47 = vsel %vm573_vm0, %v578_v46, %v327_v40 }
  0x28   :  { %279 = vmatmul.bf16.vlgmr.msra.gmra.mxu1 %v404_v37  ;;  %v533_v48 = vclamps-f32 %v579_v47, 2.1474836e+09 }
  0x29   :  { %293 = vmatmul.bf16.vlgmr.msra.gmra.mxu2 %v400_v36 }
  0x2a   :  { %307 = vmatmul.bf16.vlgmr.msra.gmra.mxu3 %v404_v37  ;;  %v336_v50 = vperm.slane %v533_v48, 0  ;;  %v337_v56 = vperm.slane %v533_v48, 1 }
  0xa4   :  { %v266_v49 = vpop.f32.mrf.mxu0 }
  0xa5   :  { %v280_v51 = vpop.f32.mrf.mxu1 }
  0xa6   :  { %v281_v52 = vadd.f32 %v280_v51, %v266_v49 }
  0xa8   :  { %v340_v53 = vadd.f32 %v336_v50, %v281_v52 }
  0xaa   :  { %v534_v54 = vclamps-f32 %v340_v53, 2.1474836e+09 }
  0xac   :  { %v294_v55 = vpop.f32.mrf.mxu2  ;;  %352 = vst [vmem:[%s693_s5] sm:$0xff] %v534_v54  ;;  %v268_v58 = vpop.f32.mrf.mxu0  ;;  %v366_v10 = vand.u32 2147483647, %v534_v54 }
  0xad   :  { %v308_v57 = vpop.f32.mrf.mxu3  ;;  %v282_v60 = vpop.f32.mrf.mxu1 }
  0xae   :  { %v309_v59 = vadd.f32 %v308_v57, %v294_v55  ;;  %v283_v61 = vadd.f32 %v282_v60, %v268_v58  ;;  %v370_v15 = vsel %vm364_vm1, %v366_v10, 0.0 }
  0xb0   :  { %v341_v63 = vadd.f32 %v337_v56, %v309_v59  ;;  %v342_v0 = vadd.f32 %v336_v50, %v283_v61 }
  0xb2   :  { %v535_v1 = vclamps-f32 %v341_v63, 2.1474836e+09  ;;  %v536_v2 = vclamps-f32 %v342_v0, 2.1474836e+09 }
  0xb4   :  { %353 = vst [vmem:[%s693_s5 + $0x8] sm:$0xff] %v535_v1  ;;  %v296_v4 = vpop.f32.mrf.mxu2  ;;  %v367_v11 = vand.u32 2147483647, %v535_v1  ;;  %v368_v13 = vand.u32 2147483647, %v536_v2 }
  0xb5   :  { %354 = vst [vmem:[%s693_s5 + $0x10] sm:$0xff] %v536_v2  ;;  %v310_v5 = vpop.f32.mrf.mxu3 }
  0xb6   :  { %v311_v6 = vadd.f32 %v310_v5, %v296_v4  ;;  %v371_v16 = vsel %vm364_vm1, %v367_v11, 0.0  ;;  %v372_v17 = vsel %vm365_vm2, %v368_v13, 0.0 }
  0xb7   :  { %v374_v19 = vmax.f32 %v370_v15, %v371_v16 }
  0xb8   :  { %v343_v9 = vadd.f32 %v337_v56, %v311_v6 }
  0xba   :  { %v537_v12 = vclamps-f32 %v343_v9, 2.1474836e+09 }
  0xbc   :  { %355 = vst [vmem:[%s693_s5 + $0x18] sm:$0xff] %v537_v12  ;;  %v369_v14 = vand.u32 2147483647, %v537_v12 }
  0xbe   :  { %v373_v18 = vsel %vm365_vm2, %v369_v14, 0.0 }
  0xbf   :  { %v375_v20 = vmax.f32 %v372_v17, %v373_v18 }
  0xc1   :  { %v376_v21 = vmax.f32 %v374_v19, %v375_v20 }
  0xc3   :  { %377 = vmax.xlane.f32.xlu0 %v376_v21 }
 0x136   :  { %v378_v22 = vpop.xlane.xlu0 %377 }
 0x137   :  { %v379_v23 = vrot.slane %v378_v22, 4 }
 0x139   :  { %v380_v24 = vmax.f32 %v378_v22, %v379_v23 }
 0x13b   :  { %v381_v25 = vrot.slane %v380_v24, 2 }
 0x13d   :  { %v382_v26 = vmax.f32 %v380_v24, %v381_v25 }
 0x13f   :  { %v383_v27 = vrot.slane %v382_v26, 1 }
 0x141   :  { %v384_v28 = vmax.f32 %v382_v26, %v383_v27 }
 0x143   :  { %580 = vpush %v384_v28 }
 0x174   :  { %s581_s1 = spop %580 }
 0x175   :  { %v386_v29 = vstv %s581_s1 }
 0x176   :  { %387 = vst [vmem:[%s694_s6] sm:$0xff] %v386_v29 }
 0x177   :  { %396 = vsyncpa [#allocation6], 1 }

</bundles_post_ra>
